<compile_context>
chip_gen: v6e
topology: v6e:2x2x1
jax: 0.10.0
libtpu: 0.0.40
codegen_flags: <defaults>
</compile_context>

<pallas_src>
import functools

import jax
import jax.numpy as jnp
from jax import lax
from jax.experimental import pallas as pl
from jax.experimental.pallas import tpu as pltpu


def _round_up(x: int, m: int) -> int:
    return ((x + m - 1) // m) * m


# ---------------------------------------------------------------------------
# Path 1: whole table resident in VMEM, gather via one-hot matmul on the MXU.
# ---------------------------------------------------------------------------
def _onehot_gather_kernel(ids_ref, table_ref, out_ref):
    # ids_ref:   (T, 1) int32 token ids for this block.
    # table_ref: (vocab, d_model) embedding table, resident in VMEM (constant
    #            index map -> DMA'd from HBM only once for the whole grid).
    # out_ref:   (T, d_model) lane/sublane-dense output block.
    t_tokens = out_ref.shape[0]
    vocab = table_ref.shape[0]
    ids = ids_ref[...]                                             # (T, 1)
    iota = lax.broadcasted_iota(jnp.int32, (t_tokens, vocab), 1)   # (T, vocab)
    # One-hot in the table dtype (exact 0/1 values; bf16 tables -> bf16).
    onehot = (iota == ids).astype(table_ref.dtype)                 # (T, vocab)
    # Mosaic's f32 matmul is multi-pass (>= bf16x3); a one-hot row selection
    # reproduces the f32 table rows to well within allclose tolerance
    # (verified against jnp.take in __main__).
    out_ref[...] = jnp.dot(
        onehot, table_ref[...], preferred_element_type=jnp.float32
    ).astype(out_ref.dtype)


def _gather_vmem_resident(ids_padded, table, block_tokens, n_blocks, n_pad):
    vocab_size, d_model = table.shape
    itemsize = table.dtype.itemsize
    ids_col = ids_padded.reshape(n_pad, 1)
    return pl.pallas_call(
        _onehot_gather_kernel,
        out_shape=jax.ShapeDtypeStruct((n_pad, d_model), table.dtype),
        grid_spec=pltpu.PrefetchScalarGridSpec(
            num_scalar_prefetch=0,
            grid=(n_blocks,),
            in_specs=[
                pl.BlockSpec((block_tokens, 1), lambda i: (i, 0)),
                # Constant index map: table is fetched from HBM once and stays
                # resident in VMEM across all grid steps (the pipeline still
                # reserves two buffers for it; the dispatch budget in
                # token_embeddings accounts for the 2x footprint).
                pl.BlockSpec((vocab_size, d_model), lambda i: (0, 0)),
            ],
            out_specs=pl.BlockSpec((block_tokens, d_model), lambda i: (i, 0)),
        ),
        compiler_params=pltpu.CompilerParams(
            dimension_semantics=("parallel",),   # v7x: shard blocks across 2 TCs
            vmem_limit_bytes=32 * 1024 * 1024,   # safe on v5e/v6e and v7x (64 MiB phys)
        ),
        cost_estimate=pl.CostEstimate(
            flops=2 * n_pad * vocab_size * d_model,
            transcendentals=0,
            bytes_accessed=(vocab_size * d_model + 2 * n_pad * d_model) * itemsize,
        ),
    )(ids_col, table)


# ---------------------------------------------------------------------------
# Path 2: table in HBM, per-row DMA gather straight into the output block.
# ---------------------------------------------------------------------------
def _dma_gather_kernel(ids_ref, table_ref, out_ref, sems,
                       *, block_tokens, dma_depth):
    # ids_ref:   (n_pad,) int32 token ids in SMEM (scalar prefetch).
    # table_ref: (vocab, d_model) embedding table in HBM (memory_space=pl.ANY).
    # out_ref:   (block_tokens, d_model) pipelined output block in VMEM; rows
    #            are DMA'd into it directly (no scratch slab, no VMEM->VMEM copy).
    # sems:      (dma_depth,) DMA-completion semaphore ring.
    base = pl.program_id(0) * block_tokens

    def _copy(token_slot, sem_slot, row):
        return pltpu.make_async_copy(
            table_ref.at[pl.ds(row, 1), :],
            out_ref.at[pl.ds(token_slot, 1), :],
            sems.at[sem_slot],
        )

    def _start(token_slot, row):
        _copy(token_slot, token_slot & (dma_depth - 1), row).start()

    # Prime the ring with dma_depth outstanding row copies.
    @pl.loop(0, dma_depth)
    def _prime(t):
        _start(t, ids_ref[base + t])

    # Steady state: retire row t, immediately refill the ring with row t+depth.
    def _steady(t, carry):
        nxt = t + dma_depth
        # Read the refill id from SMEM *before* the wait: .wait() breaks the
        # SMEM sst->sld forwarding path and would stall the scalar address
        # math every iteration.  Clamp keeps the (unused-when-guarded) read
        # in bounds of this block.
        next_row = ids_ref[base + jnp.minimum(nxt, block_tokens - 1)]
        # wait() only consumes the semaphore by the descriptor's transfer
        # size; the source row is irrelevant, so constant row 0 is used.
        _copy(t, t & (dma_depth - 1), 0).wait()

        @pl.when(nxt < block_tokens)
        def _():
            _start(nxt, next_row)

        return carry

    # Modest unroll lets the scheduler batch descriptor issue + scalar work.
    lax.fori_loop(0, block_tokens, _steady, None, unroll=4)


def _gather_hbm(flat_ids, table, block_tokens, *, max_ids_per_call=32768):
    vocab_size, d_model = table.shape
    itemsize = table.dtype.itemsize

    # Deep DMA ring: the per-row gather is latency/descriptor bound, so keep
    # up to 32 row copies in flight (power of two, <= block_tokens).
    dma_depth = 32
    while dma_depth > block_tokens:
        dma_depth //= 2

    kernel = functools.partial(
        _dma_gather_kernel, block_tokens=block_tokens, dma_depth=dma_depth)

    def _call(ids_padded, n_pad):
        n_blocks = n_pad // block_tokens
        return pl.pallas_call(
            kernel,
            out_shape=jax.ShapeDtypeStruct((n_pad, d_model), table.dtype),
            grid_spec=pltpu.PrefetchScalarGridSpec(
                num_scalar_prefetch=1,
                grid=(n_blocks,),
                in_specs=[pl.BlockSpec(memory_space=pl.ANY)],  # table stays in HBM
                out_specs=pl.BlockSpec((block_tokens, d_model),
                                       lambda i, ids: (i, 0)),
                scratch_shapes=[pltpu.SemaphoreType.DMA((dma_depth,))],
            ),
            compiler_params=pltpu.CompilerParams(
                dimension_semantics=("parallel",),   # 2x on v7x, safe on 1-TC chips
                vmem_limit_bytes=32 * 1024 * 1024,
            ),
            cost_estimate=pl.CostEstimate(
                flops=0,
                transcendentals=0,
                bytes_accessed=2 * n_pad * d_model * itemsize + n_pad * 4,
            ),
        )(ids_padded, table)

    # Chunk the token stream so the scalar-prefetched id array stays small in
    # SMEM (a 1-D SMEM array pads to next_pow2(4*N) bytes); each chunk is a
    # separate pallas_call with its own grid.
    n_tokens = flat_ids.shape[0]
    chunk = max(block_tokens, (max_ids_per_call // block_tokens) * block_tokens)
    outs = []
    for start in range(0, n_tokens, chunk):
        ids_c = flat_ids[start:start + chunk]
        n_c = ids_c.shape[0]
        n_pad = _round_up(n_c, block_tokens)
        ids_p = jnp.pad(ids_c, (0, n_pad - n_c))   # pad with valid id 0
        outs.append(_call(ids_p, n_pad)[:n_c])
    return outs[0] if len(outs) == 1 else jnp.concatenate(outs, axis=0)


# ---------------------------------------------------------------------------
# Public wrapper: TokenEmbeddings.forward equivalent.
# ---------------------------------------------------------------------------
def _pick_onehot_block_tokens(n_tokens: int) -> int:
    """Tokens per grid step for the one-hot/MXU path (generation-aware)."""
    bt = 128
    try:
        kind = jax.devices()[0].device_kind.lower()
        # v6e/v7x have a 2x256^2 MXU: 256-token blocks double MXU utilization.
        # Only use them when there are >= 2 blocks so both v7x TCs get work.
        if ("v6" in kind or "v7" in kind) and n_tokens >= 512:
            bt = 256
    except Exception:
        pass
    return bt


def token_embeddings(x, embedding_table, *,
                     vmem_table_bytes=4 * 1024 * 1024,
                     max_onehot_vocab=4096,
                     max_ids_per_call=32768):
    """Pallas equivalent of TokenEmbeddings.forward (nn.Embedding lookup).

    Args:
      x: integer token ids, any shape (e.g. (batch, seq)).
      embedding_table: (vocab_size, d_model) embedding weights.

    Returns:
      x.shape + (d_model,) embeddings with embedding_table's dtype.
    """
    vocab_size, d_model = embedding_table.shape

    flat_ids = x.reshape(-1).astype(jnp.int32)
    # Defensive clamp: an out-of-range id would otherwise drive an OOB HBM DMA.
    # TODO(synk): PyTorch raises on out-of-range ids; clamping differs silently.
    flat_ids = jnp.clip(flat_ids, 0, vocab_size - 1)
    n_tokens = flat_ids.shape[0]

    # Dispatch.  One-hot path VMEM budget (worst case, defaults):
    #   2 x table (double-buffered)  <= 8 MiB
    #   (T, vocab) one-hot + iota    <= 2 x 4 MiB  (T=256, vocab=4096, f32)
    #   2 x (T, d_model) out blocks  <  1 MiB
    # which stays well under the explicit 32 MiB scoped limit on every
    # generation (v7x's 64 MiB physical VMEM included).
    table_bytes = vocab_size * d_model * embedding_table.dtype.itemsize
    use_onehot = (table_bytes <= vmem_table_bytes
                  and vocab_size <= max_onehot_vocab)

    if use_onehot:
        block_tokens = min(_pick_onehot_block_tokens(n_tokens),
                           _round_up(n_tokens, 8))
        n_pad = _round_up(n_tokens, block_tokens)
        n_blocks = n_pad // block_tokens
        ids_padded = jnp.pad(flat_ids, (0, n_pad - n_tokens))
        out_flat = _gather_vmem_resident(
            ids_padded, embedding_table, block_tokens, n_blocks, n_pad)[:n_tokens]
    else:
        block_tokens = min(128, _round_up(n_tokens, 8))
        out_flat = _gather_hbm(flat_ids, embedding_table, block_tokens,
                               max_ids_per_call=max_ids_per_call)

    # TODO(synk): for d_model < 128 the one-hot path's output stores are
    # masked (vst.msk); folding 128 // d_model tokens into one lane-dense row
    # would recover full store density if that path ever becomes store-bound.
    return out_flat.reshape(x.shape + (d_model,))


if __name__ == "__main__":
    # Module hyper-parameters (small, consistent with the forward pass).
    d_model = 32
    vocab_size = 64
    batch, seq = 2, 8

    key = jax.random.PRNGKey(0)
    k_emb, k_ids, k_ids2 = jax.random.split(key, 3)

    # nn.Embedding default init: N(0, 1) float32.
    embedding_table = jax.random.normal(
        k_emb, (vocab_size, d_model), dtype=jnp.float32)
    x = jax.random.randint(
        k_ids, (batch, seq), minval=0, maxval=vocab_size, dtype=jnp.int32)
    ref = jnp.take(embedding_table, x, axis=0)

    # Default dispatch: small (8 KiB) table -> VMEM-resident one-hot path.
    out = jax.block_until_ready(token_embeddings(x, embedding_table))
    assert out.shape == (batch, seq, d_model)
    assert out.dtype == embedding_table.dtype
    assert jnp.allclose(out, ref), "VMEM-resident path mismatch"

    # Force the large-table path (direct HBM->out_ref DMA gather) on same data.
    out_hbm = jax.block_until_ready(
        token_embeddings(x, embedding_table, vmem_table_bytes=0))
    assert jnp.allclose(out_hbm, ref), "HBM DMA-gather path mismatch"

    # Multi-block + padding exercise: 150 tokens -> multiple blocks.
    x2 = jax.random.randint(
        k_ids2, (3, 50), minval=0, maxval=vocab_size, dtype=jnp.int32)
    ref2 = jnp.take(embedding_table, x2, axis=0)
    out2_vmem = jax.block_until_ready(token_embeddings(x2, embedding_table))
    out2_hbm = jax.block_until_ready(
        token_embeddings(x2, embedding_table, vmem_table_bytes=0))
    assert jnp.allclose(out2_vmem, ref2), "VMEM-resident multi-block mismatch"
    assert jnp.allclose(out2_hbm, ref2), "HBM multi-block mismatch"

    # Exercise the SMEM id-chunking path (multiple pallas_calls, concatenated).
    out2_chunked = jax.block_until_ready(
        token_embeddings(x2, embedding_table, vmem_table_bytes=0,
                         max_ids_per_call=64))
    assert jnp.allclose(out2_chunked, ref2), "HBM chunked-ids mismatch"

    print("KERNEL_OK")
</pallas_src>

<mosaic_0001>
module attributes {stable_mosaic.version = 11 : i64} {
  func.func @_onehot_gather_kernel(%arg0: i32, %arg1: memref<16x1xi32, #tpu.memory_space<vmem>>, %arg2: memref<64x32xf32, #tpu.memory_space<vmem>>, %arg3: memref<16x32xf32, #tpu.memory_space<vmem>>) attributes {dimension_semantics = [#tpu.dimension_semantics<parallel>], iteration_bounds = array<i64: 1>, scalar_prefetch = 0 : i64, scratch_operands = 0 : i64, tpu.core_type = #tpu.core_type<tc>, window_params = [{transform_indices = @transform_0, window_bounds = array<i64: 16, 1>}, {pipeline_mode = #tpu.pipeline_mode<synchronous>, transform_indices = @transform_1, window_bounds = array<i64: 64, 32>}, {transform_indices = @transform_2, window_bounds = array<i64: 16, 32>}]} {
    %c0 = arith.constant 0 : index
    %c0_0 = arith.constant 0 : index
    %0 = vector.load %arg1[%c0, %c0_0] : memref<16x1xi32, #tpu.memory_space<vmem>>, vector<16x1xi32>
    %1 = tpu.iota {dimensions = array<i32: 1>} : vector<16x64xi32>
    %2 = vector.broadcast %0 : vector<16x1xi32> to vector<16x64xi32>
    %3 = arith.cmpi eq, %1, %2 : vector<16x64xi32>
    %4 = arith.extui %3 : vector<16x64xi1> to vector<16x64xi32>
    %5 = arith.sitofp %4 : vector<16x64xi32> to vector<16x64xf32>
    %c0_1 = arith.constant 0 : index
    %c0_2 = arith.constant 0 : index
    %6 = vector.load %arg2[%c0_1, %c0_2] : memref<64x32xf32, #tpu.memory_space<vmem>>, vector<64x32xf32>
    %cst = arith.constant dense<0.000000e+00> : vector<16x32xf32>
    %7 = tpu.matmul %5, %6, %cst {dimension_numbers = #tpu.dot_dimension_numbers<[1], [0], [0], [1], [0, 0, 1, 1], [], []>} : vector<16x64xf32>, vector<64x32xf32>, vector<16x32xf32> -> vector<16x32xf32>
    %c0_3 = arith.constant 0 : index
    %c0_4 = arith.constant 0 : index
    %8 = vector.load %arg3[%c0_3, %c0_4] : memref<16x32xf32, #tpu.memory_space<vmem>>, vector<16x32xf32>
    tpu.vector_store %arg3[%c0_3, %c0_4], %7 {strides = array<i32>} : memref<16x32xf32, #tpu.memory_space<vmem>>, vector<16x32xf32>,
    return
  }
  func.func @transform_0(%arg0: i32) -> (i32, i32) {
    %c0_i32 = arith.constant 0 : i32
    %c0_i32_0 = arith.constant 0 : i32
    return %arg0, %c0_i32 : i32, i32
  }
  func.func @transform_1(%arg0: i32) -> (i32, i32) {
    %c0_i32 = arith.constant 0 : i32
    %c0_i32_0 = arith.constant 0 : i32
    %c0_i32_1 = arith.constant 0 : i32
    return %c0_i32, %c0_i32_0 : i32, i32
  }
  func.func @transform_2(%arg0: i32) -> (i32, i32) {
    %c0_i32 = arith.constant 0 : i32
    %c0_i32_0 = arith.constant 0 : i32
    return %arg0, %c0_i32 : i32, i32
  }
}

</mosaic_0001>

<bundles_post_ra>
// kernel: tpu_custom_call.1
= control target key start
LH: loop header
LB: loop body
LE: loop exit
PB: predicated region body
PF: predicated region fallthrough
CT: control target
= control target key end

     0   :  { %v198_v2 = vmov 0   ;;  %s251_s0 = inlined_call_operand.vmem [shape: s32[16,1], index: 0, kind: input, shape index: {}]   ;;  %s252_s1 = inlined_call_operand.vmem [shape: f32[64,32], index: 1, kind: input, shape index: {}]   ;;  %s253_s2 = inlined_call_operand.hbm [shape: f32[16,32], index: 2, kind: output, shape index: {}]  }
   0x1   :  { %v12_v0 = vld [vmem:[%s251_s0] sm:$0xff]  ;;  %v35_v1 = vld [vmem:[%s252_s1 + $0x38] sm:$0xff]  ;;  %175 = vset.pattern.permute.xlu0 %v198_v2  ;;  %v34_v3 = vld [vmem:[%s252_s1 + $0x30] sm:$0xff] }
   0x2   :  { %151 = vmatprep.subr.mxu0 %v35_v1  ;;  %17 = vperm.xlu0 %175, %v12_v0   ;;  %v33_v4 = vld [vmem:[%s252_s1 + $0x28] sm:$0xff] }
   0x3   :  { %152 = vmatpush3.msra.mxu0 %v35_v1  ;;  %v13_v5 = vld [vmem:[%s251_s0 + $0x8] sm:$0xff] }
   0x4   :  { %153 = vmatprep.subr.mxu0 %v34_v3 }
   0x5   :  { %7 = vsyncpa [#allocation3], 0  ;;  %154 = vmatpush3.msra.mxu0 %v34_v3  ;;  %v32_v6 = vld [vmem:[%s252_s1 + $0x20] sm:$0xff]  ;;  %v31_v7 = vld [vmem:[%s252_s1 + $0x18] sm:$0xff]  ;;  %v14_v11 = vlaneseq  ;;  %vm36_vm0 = vcmask 523264   ;;  %v199_v14 = vmov 0.0  }
   0x6   :  { %155 = vmatprep.subr.mxu0 %v33_v4  ;;  %20 = vperm.xlu0 %175, %v13_v5   ;;  %v30_v8 = vld [vmem:[%s252_s1 + $0x10] sm:$0xff]  ;;  %v29_v9 = vld [vmem:[%s252_s1 + $0x8] sm:$0xff]  ;;  %v28_v10 = vld [vmem:[%s252_s1] sm:$0xff]  ;;  %s200_s28 = smov [#allocation2]   ;;  %vm118_vm3 = vcmask 261120  }
   0x7   :  { %156 = vmatpush3.msra.mxu0 %v33_v4  ;;  %v15_v12 = vand.u32 127, %v14_v11  ;;  %s126_s29 = sshll.u32 %s200_s28, 4  ;;  %s127_s29 = int_to_ptr.vmem [resolvable:$true] %s126_s29 }
   0x8   :  { %157 = vmatprep.subr.mxu0 %v32_v6  ;;  %s176_s1 = scalar_lea.vmem %s127_s29, 256  ;;  %p181_p1 = scmp.lt.s32.totalorder %s127_s29, %s127_s29 }
   0x9   :  { %158 = vmatpush3.msra.mxu0 %v32_v6  ;;  %p177_p0 = scmp.ne.s32.totalorder %s127_s29, %s176_s1  ;;  %p182_p2 = scmp.lt.s32.totalorder %s176_s1, %s176_s1 }
   0xa   :  { %159 = vmatprep.subr.mxu0 %v31_v7 }
   0xb   :  { %160 = vmatpush3.msra.mxu0 %v31_v7  ;;  %p183_p3 = por %p182_p2, %p181_p1 }
   0xc   :  { %161 = vmatprep.subr.mxu0 %v30_v8 }
   0xd   :  { %162 = vmatpush3.msra.mxu0 %v30_v8  ;;  %p184_p4 = pnand %p183_p3, %p177_p0 }
   0xe   :  { %163 = vmatprep.subr.mxu0 %v29_v9 }
   0xf   :  { %164 = vmatpush3.msra.mxu0 %v29_v9 }
  0x10   :  { %165 = vmatprep.subr.mxu0 %v28_v10 }
  0x11   :  { %166 = vmatpush3.msra.mxu0 %v28_v10 }
  0x7d   :  { %v18_v13 = vpop.permute.xlu0 %17 }
  0x7e   :  { %vm22_vm1 = vcmp.eq.s32.totalorder %v15_v12, %v18_v13 }
  0x7f   :  { %v137_v15 = vsel %vm22_vm1, 1.0, %v199_v14 }
  0x80   :  { %167 = vmatprep.mubr.msk.f32.mxu0 %vm36_vm0, %v137_v15 }
  0x81   :  { %v21_v16 = vpop.permute.xlu0 %20 }
  0x82   :  { %vm23_vm2 = vcmp.eq.s32.totalorder %v15_v12, %v21_v16 }
  0x83   :  { %v138_v17 = vsel %vm23_vm2, 1.0, %v199_v14 }
  0x84   :  { %168 = vmatmul.mubr.msk.f32.vlgmr.msra.gmra.mxu0 %vm36_vm0, %v138_v17 }
 0x144   :  { %v169_v18 = vpop.f32.mrf.mxu0 }
 0x145   :  { %120 = vst.msk [vmem:[#allocation2 + $0x8] sm:$0xff] %vm118_vm3, %v169_v18 }
 0x146   :  { %v109_v19 = vpop.f32.mrf.mxu0 }
 0x147   :  { %119 = vst.msk [vmem:[#allocation2] sm:$0xff] %vm118_vm3, %v109_v19 }
 0x148   :  { %187 = shalt.err (!%p184_p4)
}
 0x149   :  { %s201_s30 = smov 128   ;;  %s202_s3 = smov 8  }
 0x14a   :  { %132 = dma.vmem_to_hbm [thread:$0]  %s127_s29, 256, %s253_s2, [#allocation3], %s201_s30, %s201_s30, %s202_s3  }
 0x14b   :  { %196 = dma.done.wait [#allocation3], 256  }
 0x14c   :  { %197 = vsyncadd [#allocation3], 4294967040 }
 0x14d   :  { %136 = vsyncpa [#allocation3], 1 }

</bundles_post_ra>
